<compile_context>
chip_gen: v5e
topology: v5e:2x2
jax: 0.10.0
libtpu: 0.0.40
codegen_flags: <defaults>
</compile_context>

<pallas_src>
import functools

import numpy as np
import jax
import jax.numpy as jnp
from jax import lax
from jax.experimental import pallas as pl
from jax.experimental.pallas import tpu as pltpu

_KEYS = ("quality", "clear", "artifact", "position")


def _round_up(x, m):
    return (x + m - 1) // m * m


def _loss_kernel(slab_ref, tgt_ref, selsum_ref, selmean_ref, out_ref, *,
                 offsets, counts, steps_per_part, n_rows):
    p = pl.program_id(0)                     # parallel (TensorCore) axis
    s = pl.program_id(1)                     # reduction axis (resident output)

    @pl.when(s == 0)
    def _init():
        out_ref[...] = jnp.zeros_like(out_ref)

    x = slab_ref[...].astype(jnp.float32)    # [tn, lanes]
    tn, lanes = x.shape
    neg = jnp.float32(-1e30)

    # Per-head max, broadcast back onto that head's lanes -> one exp pass total.
    lid = lax.broadcasted_iota(jnp.int32, (tn, lanes), 1)
    m_lane = jnp.zeros_like(x)
    for off, cnt in zip(offsets, counts):
        mask_h = (lid >= off) & (lid < off + cnt)
        m_h = jnp.max(jnp.where(mask_h, x, neg), axis=-1, keepdims=True)
        m_lane = m_lane + jnp.where(mask_h, m_h, jnp.float32(0.0))

    e = jnp.exp(x - m_lane)                  # single EUP pass for all 4 heads

    # Segment reductions on the (otherwise idle) MXU:
    #   sums4[:, h] = sum_{c in head h} exp(x_c - m_h)
    #   m4[:, h]    = m_h   (selector columns pre-scaled by 1/C_h)
    sums4 = jnp.dot(e, selsum_ref[...], preferred_element_type=jnp.float32,
                    precision=lax.Precision.HIGHEST)          # [tn, 4]
    m4 = jnp.dot(m_lane, selmean_ref[...], preferred_element_type=jnp.float32,
                 precision=lax.Precision.HIGHEST)             # [tn, 4]

    # CE_h = logsumexp(x_h) - x_h[target] = log(sums4) + m4 - pre-gathered target logit
    ce = jnp.log(sums4) + m4 - tgt_ref[...]                   # [tn, 4]

    base = (p * steps_per_part + s) * tn

    @pl.when(base + tn <= n_rows)            # full tile: unmasked reduction
    def _full_tile():
        out_ref[...] = out_ref[...] + jnp.sum(ce, keepdims=True)

    @pl.when(base + tn > n_rows)             # tile straddles end of batch: mask rows
    def _partial_tile():
        rid = lax.broadcasted_iota(jnp.int32, (tn, 1), 0) + base
        valid = (rid < n_rows).astype(jnp.float32)
        out_ref[...] = out_ref[...] + jnp.sum(ce * valid, keepdims=True)


def experiment_loss(inputs, targets, *, block_rows=1024):
    """inputs[k]: [N, C_k] logits (any float dtype); targets[k]: [N] int class ids.

    Returns CE(quality) + CE(clear) + CE(artifact) + CE(position), each mean over N.
    """
    # TODO(synk): nn.CrossEntropyLoss's ignore_index=-100 / class weights are not
    # handled; targets are assumed to be valid in-range class indices.
    n = int(inputs[_KEYS[0]].shape[0])
    counts = tuple(int(inputs[k].shape[-1]) for k in _KEYS)
    offsets = tuple(int(sum(counts[:h])) for h in range(len(counts)))
    nh = len(_KEYS)
    total_c = int(sum(counts))
    lanes = max(8, _round_up(total_c, 8))    # 13 -> 16 (full last dim keeps BlockSpec legal)

    dtype = jnp.result_type(*(inputs[k].dtype for k in _KEYS))

    # Tightly packed [N, lanes] logits slab; pad lanes are excluded by the selectors.
    parts = [inputs[k].astype(dtype) for k in _KEYS]
    if lanes > total_c:
        parts.append(jnp.zeros((n, lanes - total_c), dtype))
    slab = jnp.concatenate(parts, axis=-1)                    # [N, lanes]

    # Pre-gathered target logits, one column per head: [N, 4] f32.
    tgt4 = jnp.concatenate(
        [jnp.take_along_axis(inputs[k].astype(jnp.float32),
                             targets[k].astype(jnp.int32)[:, None], axis=-1)
         for k in _KEYS], axis=-1)                            # [N, 4]

    # Constant head selectors (trace-time numpy, exact).
    sel_np = np.zeros((lanes, nh), np.float32)
    for h, (off, cnt) in enumerate(zip(offsets, counts)):
        sel_np[off:off + cnt, h] = 1.0
    sel_sum = jnp.asarray(sel_np)                             # [lanes, 4] 0/1
    sel_mean = jnp.asarray(sel_np / np.asarray(counts, np.float32)[None, :])

    block_rows = max(8, _round_up(block_rows, 8))
    tn = min(_round_up(n, 8), block_rows)                     # rows per grid step

    n_steps = -(-n // tn)
    num_parts = 2 if n_steps >= 2 else 1                      # use both TCs on v7x
    steps_per_part = -(-n_steps // num_parts)
    n_pad = num_parts * steps_per_part * tn
    if n_pad != n:                                            # padded rows masked in-kernel
        slab = jnp.pad(slab, ((0, n_pad - n), (0, 0)))
        tgt4 = jnp.pad(tgt4, ((0, n_pad - n), (0, 0)))

    kernel = functools.partial(_loss_kernel, offsets=offsets, counts=counts,
                               steps_per_part=steps_per_part, n_rows=n)

    out = pl.pallas_call(
        kernel,
        out_shape=jax.ShapeDtypeStruct((num_parts, 1), jnp.float32),
        grid_spec=pltpu.PrefetchScalarGridSpec(
            num_scalar_prefetch=0,
            grid=(num_parts, steps_per_part),
            in_specs=[
                pl.BlockSpec((tn, lanes), lambda p, s: (p * steps_per_part + s, 0)),
                pl.BlockSpec((tn, nh), lambda p, s: (p * steps_per_part + s, 0)),
                pl.BlockSpec((lanes, nh), lambda p, s: (0, 0)),
                pl.BlockSpec((lanes, nh), lambda p, s: (0, 0)),
            ],
            out_specs=pl.BlockSpec((1, 1), lambda p, s: (p, 0)),
        ),
        compiler_params=pltpu.CompilerParams(
            # batch split is parallel (megacore); inner axis accumulates into the
            # resident per-part output block.
            dimension_semantics=("parallel", "arbitrary"),
            vmem_limit_bytes=32 * 1024 * 1024),
    )(slab, tgt4, sel_sum, sel_mean)

    return jnp.sum(out) * jnp.float32(1.0 / n)


def _reference_loss(inputs, targets):
    """Plain-JAX reference (mirrors nn.CrossEntropyLoss, reduction='mean')."""
    total = jnp.float32(0.0)
    for k in _KEYS:
        x = inputs[k].astype(jnp.float32)
        t = targets[k].astype(jnp.int32)
        logp = jax.nn.log_softmax(x, axis=-1)
        total = total + jnp.mean(-jnp.take_along_axis(logp, t[:, None], axis=-1))
    return total


if __name__ == "__main__":
    key = jax.random.PRNGKey(0)
    n_classes = {"quality": 5, "clear": 2, "artifact": 2, "position": 4}

    def make(key, n):
        inputs, targets = {}, {}
        for name, c in n_classes.items():
            key, k1, k2 = jax.random.split(key, 3)
            inputs[name] = jax.random.normal(k1, (n, c), dtype=jnp.float32)
            targets[name] = jax.random.randint(k2, (n,), 0, c, dtype=jnp.int32)
        return key, inputs, targets

    # small single-tile case (grid (1,1))
    key, inp, tgt = make(key, 8)
    loss = jax.block_until_ready(experiment_loss(inp, tgt))
    ref = _reference_loss(inp, tgt)
    assert jnp.allclose(loss, ref, rtol=1e-4, atol=1e-4), (loss, ref)

    # ragged batch: exercises the 2-part parallel split + partial-tile masking
    key, inp2, tgt2 = make(key, 13)
    loss2 = jax.block_until_ready(experiment_loss(inp2, tgt2, block_rows=8))
    ref2 = _reference_loss(inp2, tgt2)
    assert jnp.allclose(loss2, ref2, rtol=1e-4, atol=1e-4), (loss2, ref2)

    # multi-step accumulation per part + a fully padded trailing tile
    key, inp3, tgt3 = make(key, 40)
    loss3 = jax.block_until_ready(experiment_loss(inp3, tgt3, block_rows=8))
    ref3 = _reference_loss(inp3, tgt3)
    assert jnp.allclose(loss3, ref3, rtol=1e-4, atol=1e-4), (loss3, ref3)

    print("KERNEL_OK")
</pallas_src>

<mosaic_0001>
module attributes {stable_mosaic.version = 11 : i64} {
  func.func @_loss_kernel(%arg0: i32, %arg1: i32, %arg2: memref<8x16xf32, #tpu.memory_space<vmem>>, %arg3: memref<8x4xf32, #tpu.memory_space<vmem>>, %arg4: memref<16x4xf32, #tpu.memory_space<vmem>>, %arg5: memref<16x4xf32, #tpu.memory_space<vmem>>, %arg6: memref<1x1xf32, #tpu.memory_space<vmem>>) attributes {dimension_semantics = [#tpu.dimension_semantics<parallel>, #tpu.dimension_semantics<arbitrary>], iteration_bounds = array<i64: 1, 1>, scalar_prefetch = 0 : i64, scratch_operands = 0 : i64, tpu.core_type = #tpu.core_type<tc>, window_params = [{transform_indices = @transform_0, window_bounds = array<i64: 8, 16>}, {transform_indices = @transform_1, window_bounds = array<i64: 8, 4>}, {pipeline_mode = #tpu.pipeline_mode<synchronous>, transform_indices = @transform_2, window_bounds = array<i64: 16, 4>}, {pipeline_mode = #tpu.pipeline_mode<synchronous>, transform_indices = @transform_3, window_bounds = array<i64: 16, 4>}, {transform_indices = @transform_4, window_bounds = array<i64: 1, 1>}]} {
    %c0_i32 = arith.constant 0 : i32
    %0 = arith.cmpi eq, %arg1, %c0_i32 : i32
    %1 = arith.extui %0 : i1 to i32
    %c0_i32_0 = arith.constant 0 : i32
    %2 = arith.cmpi ne, %1, %c0_i32_0 : i32
    scf.if %2 {
      %cst_32 = arith.constant 0.000000e+00 : f32
      %83 = vector.broadcast %cst_32 : f32 to vector<1x1xf32>
      %c0_33 = arith.constant 0 : index
      %c0_34 = arith.constant 0 : index
      %84 = vector.load %arg6[%c0_33, %c0_34] : memref<1x1xf32, #tpu.memory_space<vmem>>, vector<1x1xf32>
      tpu.vector_store %arg6[%c0_33, %c0_34], %83 {strides = array<i32>} : memref<1x1xf32, #tpu.memory_space<vmem>>, vector<1x1xf32>,
    } else {
    }
    %c0 = arith.constant 0 : index
    %c0_1 = arith.constant 0 : index
    %3 = vector.load %arg2[%c0, %c0_1] : memref<8x16xf32, #tpu.memory_space<vmem>>, vector<8x16xf32>
    %4 = tpu.iota {dimensions = array<i32: 1>} : vector<8x16xi32>
    %cst = arith.constant 0.000000e+00 : f32
    %5 = vector.broadcast %cst : f32 to vector<8x16xf32>
    %c0_i32_2 = arith.constant 0 : i32
    %6 = vector.broadcast %c0_i32_2 : i32 to vector<8x16xi32>
    %7 = arith.cmpi sge, %4, %6 : vector<8x16xi32>
    %c5_i32 = arith.constant 5 : i32
    %8 = vector.broadcast %c5_i32 : i32 to vector<8x16xi32>
    %9 = arith.cmpi slt, %4, %8 : vector<8x16xi32>
    %10 = arith.andi %7, %9 : vector<8x16xi1>
    %cst_3 = arith.constant -1.000000e+30 : f32
    %11 = vector.broadcast %cst_3 : f32 to vector<8x16xf32>
    %12 = arith.select %10, %3, %11 : vector<8x16xi1>, vector<8x16xf32>
    %cst_4 = arith.constant dense<0xFF800000> : vector<8xf32>
    %13 = vector.multi_reduction <maximumf>, %12, %cst_4 [1] : vector<8x16xf32> to vector<8xf32>
    %14 = vector.shape_cast %13 : vector<8xf32> to vector<8x1xf32>
    %cst_5 = arith.constant 0.000000e+00 : f32
    %15 = vector.shape_cast %14 : vector<8x1xf32> to vector<8x1xf32>
    %16 = vector.broadcast %15 : vector<8x1xf32> to vector<8x16xf32>
    %17 = vector.broadcast %cst_5 : f32 to vector<8x16xf32>
    %18 = arith.select %10, %16, %17 : vector<8x16xi1>, vector<8x16xf32>
    %19 = arith.addf %5, %18 : vector<8x16xf32>
    %c5_i32_6 = arith.constant 5 : i32
    %20 = vector.broadcast %c5_i32_6 : i32 to vector<8x16xi32>
    %21 = arith.cmpi sge, %4, %20 : vector<8x16xi32>
    %c7_i32 = arith.constant 7 : i32
    %22 = vector.broadcast %c7_i32 : i32 to vector<8x16xi32>
    %23 = arith.cmpi slt, %4, %22 : vector<8x16xi32>
    %24 = arith.andi %21, %23 : vector<8x16xi1>
    %cst_7 = arith.constant -1.000000e+30 : f32
    %25 = vector.broadcast %cst_7 : f32 to vector<8x16xf32>
    %26 = arith.select %24, %3, %25 : vector<8x16xi1>, vector<8x16xf32>
    %cst_8 = arith.constant dense<0xFF800000> : vector<8xf32>
    %27 = vector.multi_reduction <maximumf>, %26, %cst_8 [1] : vector<8x16xf32> to vector<8xf32>
    %28 = vector.shape_cast %27 : vector<8xf32> to vector<8x1xf32>
    %cst_9 = arith.constant 0.000000e+00 : f32
    %29 = vector.shape_cast %28 : vector<8x1xf32> to vector<8x1xf32>
    %30 = vector.broadcast %29 : vector<8x1xf32> to vector<8x16xf32>
    %31 = vector.broadcast %cst_9 : f32 to vector<8x16xf32>
    %32 = arith.select %24, %30, %31 : vector<8x16xi1>, vector<8x16xf32>
    %33 = arith.addf %19, %32 : vector<8x16xf32>
    %c7_i32_10 = arith.constant 7 : i32
    %34 = vector.broadcast %c7_i32_10 : i32 to vector<8x16xi32>
    %35 = arith.cmpi sge, %4, %34 : vector<8x16xi32>
    %c9_i32 = arith.constant 9 : i32
    %36 = vector.broadcast %c9_i32 : i32 to vector<8x16xi32>
    %37 = arith.cmpi slt, %4, %36 : vector<8x16xi32>
    %38 = arith.andi %35, %37 : vector<8x16xi1>
    %cst_11 = arith.constant -1.000000e+30 : f32
    %39 = vector.broadcast %cst_11 : f32 to vector<8x16xf32>
    %40 = arith.select %38, %3, %39 : vector<8x16xi1>, vector<8x16xf32>
    %cst_12 = arith.constant dense<0xFF800000> : vector<8xf32>
    %41 = vector.multi_reduction <maximumf>, %40, %cst_12 [1] : vector<8x16xf32> to vector<8xf32>
    %42 = vector.shape_cast %41 : vector<8xf32> to vector<8x1xf32>
    %cst_13 = arith.constant 0.000000e+00 : f32
    %43 = vector.shape_cast %42 : vector<8x1xf32> to vector<8x1xf32>
    %44 = vector.broadcast %43 : vector<8x1xf32> to vector<8x16xf32>
    %45 = vector.broadcast %cst_13 : f32 to vector<8x16xf32>
    %46 = arith.select %38, %44, %45 : vector<8x16xi1>, vector<8x16xf32>
    %47 = arith.addf %33, %46 : vector<8x16xf32>
    %c9_i32_14 = arith.constant 9 : i32
    %48 = vector.broadcast %c9_i32_14 : i32 to vector<8x16xi32>
    %49 = arith.cmpi sge, %4, %48 : vector<8x16xi32>
    %c13_i32 = arith.constant 13 : i32
    %50 = vector.broadcast %c13_i32 : i32 to vector<8x16xi32>
    %51 = arith.cmpi slt, %4, %50 : vector<8x16xi32>
    %52 = arith.andi %49, %51 : vector<8x16xi1>
    %cst_15 = arith.constant -1.000000e+30 : f32
    %53 = vector.broadcast %cst_15 : f32 to vector<8x16xf32>
    %54 = arith.select %52, %3, %53 : vector<8x16xi1>, vector<8x16xf32>
    %cst_16 = arith.constant dense<0xFF800000> : vector<8xf32>
    %55 = vector.multi_reduction <maximumf>, %54, %cst_16 [1] : vector<8x16xf32> to vector<8xf32>
    %56 = vector.shape_cast %55 : vector<8xf32> to vector<8x1xf32>
    %cst_17 = arith.constant 0.000000e+00 : f32
    %57 = vector.shape_cast %56 : vector<8x1xf32> to vector<8x1xf32>
    %58 = vector.broadcast %57 : vector<8x1xf32> to vector<8x16xf32>
    %59 = vector.broadcast %cst_17 : f32 to vector<8x16xf32>
    %60 = arith.select %52, %58, %59 : vector<8x16xi1>, vector<8x16xf32>
    %61 = arith.addf %47, %60 : vector<8x16xf32>
    %62 = arith.subf %3, %61 : vector<8x16xf32>
    %63 = math.exp %62 : vector<8x16xf32>
    %c0_18 = arith.constant 0 : index
    %c0_19 = arith.constant 0 : index
    %64 = vector.load %arg4[%c0_18, %c0_19] : memref<16x4xf32, #tpu.memory_space<vmem>>, vector<16x4xf32>
    %cst_20 = arith.constant dense<0.000000e+00> : vector<8x4xf32>
    %65 = tpu.matmul %63, %64, %cst_20 {dimension_numbers = #tpu.dot_dimension_numbers<[1], [0], [0], [1], [0, 0, 1, 1], [], []>, precision = #tpu.contract_precision<fp32>} : vector<8x16xf32>, vector<16x4xf32>, vector<8x4xf32> -> vector<8x4xf32>
    %c0_21 = arith.constant 0 : index
    %c0_22 = arith.constant 0 : index
    %66 = vector.load %arg5[%c0_21, %c0_22] : memref<16x4xf32, #tpu.memory_space<vmem>>, vector<16x4xf32>
    %cst_23 = arith.constant dense<0.000000e+00> : vector<8x4xf32>
    %67 = tpu.matmul %61, %66, %cst_23 {dimension_numbers = #tpu.dot_dimension_numbers<[1], [0], [0], [1], [0, 0, 1, 1], [], []>, precision = #tpu.contract_precision<fp32>} : vector<8x16xf32>, vector<16x4xf32>, vector<8x4xf32> -> vector<8x4xf32>
    %68 = math.log %65 : vector<8x4xf32>
    %69 = arith.addf %68, %67 : vector<8x4xf32>
    %c0_24 = arith.constant 0 : index
    %c0_25 = arith.constant 0 : index
    %70 = vector.load %arg3[%c0_24, %c0_25] : memref<8x4xf32, #tpu.memory_space<vmem>>, vector<8x4xf32>
    %71 = arith.subf %69, %70 : vector<8x4xf32>
    %c1_i32 = arith.constant 1 : i32
    %72 = arith.muli %arg0, %c1_i32 : i32
    %73 = arith.addi %72, %arg1 : i32
    %c8_i32 = arith.constant 8 : i32
    %74 = arith.muli %73, %c8_i32 : i32
    %c8_i32_26 = arith.constant 8 : i32
    %75 = arith.addi %74, %c8_i32_26 : i32
    %c8_i32_27 = arith.constant 8 : i32
    %76 = arith.cmpi sle, %75, %c8_i32_27 : i32
    %77 = arith.extui %76 : i1 to i32
    %c0_i32_28 = arith.constant 0 : i32
    %78 = arith.cmpi ne, %77, %c0_i32_28 : i32
    scf.if %78 {
      %c0_32 = arith.constant 0 : index
      %c0_33 = arith.constant 0 : index
      %83 = vector.load %arg6[%c0_32, %c0_33] : memref<1x1xf32, #tpu.memory_space<vmem>>, vector<1x1xf32>
      %84 = vector.shape_cast %71 : vector<8x4xf32> to vector<1x8x4xf32>
      %cst_34 = arith.constant dense<0.000000e+00> : vector<1xf32>
      %85 = vector.multi_reduction <add>, %84, %cst_34 [1, 2] : vector<1x8x4xf32> to vector<1xf32>
      %86 = vector.shape_cast %85 : vector<1xf32> to vector<1x1x1xf32>
      %87 = vector.extract %86[0, 0, 0] : f32 from vector<1x1x1xf32>
      %88 = vector.broadcast %87 : f32 to vector<1x1xf32>
      %89 = arith.addf %83, %88 : vector<1x1xf32>
      %c0_35 = arith.constant 0 : index
      %c0_36 = arith.constant 0 : index
      %90 = vector.load %arg6[%c0_35, %c0_36] : memref<1x1xf32, #tpu.memory_space<vmem>>, vector<1x1xf32>
      tpu.vector_store %arg6[%c0_35, %c0_36], %89 {strides = array<i32>} : memref<1x1xf32, #tpu.memory_space<vmem>>, vector<1x1xf32>,
    } else {
    }
    %c8_i32_29 = arith.constant 8 : i32
    %79 = arith.addi %74, %c8_i32_29 : i32
    %c8_i32_30 = arith.constant 8 : i32
    %80 = arith.cmpi sgt, %79, %c8_i32_30 : i32
    %81 = arith.extui %80 : i1 to i32
    %c0_i32_31 = arith.constant 0 : i32
    %82 = arith.cmpi ne, %81, %c0_i32_31 : i32
    scf.if %82 {
      %83 = tpu.iota {dimensions = array<i32: 0>} : vector<8x1xi32>
      %84 = vector.broadcast %74 : i32 to vector<8x1xi32>
      %85 = arith.addi %83, %84 : vector<8x1xi32>
      %c8_i32_32 = arith.constant 8 : i32
      %86 = vector.broadcast %c8_i32_32 : i32 to vector<8x1xi32>
      %87 = arith.cmpi slt, %85, %86 : vector<8x1xi32>
      %88 = arith.extui %87 : vector<8x1xi1> to vector<8x1xi32>
      %89 = arith.sitofp %88 : vector<8x1xi32> to vector<8x1xf32>
      %c0_33 = arith.constant 0 : index
      %c0_34 = arith.constant 0 : index
      %90 = vector.load %arg6[%c0_33, %c0_34] : memref<1x1xf32, #tpu.memory_space<vmem>>, vector<1x1xf32>
      %91 = vector.broadcast %89 : vector<8x1xf32> to vector<8x4xf32>
      %92 = arith.mulf %71, %91 : vector<8x4xf32>
      %93 = vector.shape_cast %92 : vector<8x4xf32> to vector<1x8x4xf32>
      %cst_35 = arith.constant dense<0.000000e+00> : vector<1xf32>
      %94 = vector.multi_reduction <add>, %93, %cst_35 [1, 2] : vector<1x8x4xf32> to vector<1xf32>
      %95 = vector.shape_cast %94 : vector<1xf32> to vector<1x1x1xf32>
      %96 = vector.extract %95[0, 0, 0] : f32 from vector<1x1x1xf32>
      %97 = vector.broadcast %96 : f32 to vector<1x1xf32>
      %98 = arith.addf %90, %97 : vector<1x1xf32>
      %c0_36 = arith.constant 0 : index
      %c0_37 = arith.constant 0 : index
      %99 = vector.load %arg6[%c0_36, %c0_37] : memref<1x1xf32, #tpu.memory_space<vmem>>, vector<1x1xf32>
      tpu.vector_store %arg6[%c0_36, %c0_37], %98 {strides = array<i32>} : memref<1x1xf32, #tpu.memory_space<vmem>>, vector<1x1xf32>,
    } else {
    }
    return
  }
  func.func @transform_0(%arg0: i32, %arg1: i32) -> (i32, i32) {
    %c1_i32 = arith.constant 1 : i32
    %0 = arith.muli %arg0, %c1_i32 : i32
    %1 = arith.addi %0, %arg1 : i32
    %c0_i32 = arith.constant 0 : i32
    %c0_i32_0 = arith.constant 0 : i32
    return %1, %c0_i32 : i32, i32
  }
  func.func @transform_1(%arg0: i32, %arg1: i32) -> (i32, i32) {
    %c1_i32 = arith.constant 1 : i32
    %0 = arith.muli %arg0, %c1_i32 : i32
    %1 = arith.addi %0, %arg1 : i32
    %c0_i32 = arith.constant 0 : i32
    %c0_i32_0 = arith.constant 0 : i32
    return %1, %c0_i32 : i32, i32
  }
  func.func @transform_2(%arg0: i32, %arg1: i32) -> (i32, i32) {
    %c0_i32 = arith.constant 0 : i32
    %c0_i32_0 = arith.constant 0 : i32
    %c0_i32_1 = arith.constant 0 : i32
    return %c0_i32, %c0_i32_0 : i32, i32
  }
  func.func @transform_3(%arg0: i32, %arg1: i32) -> (i32, i32) {
    %c0_i32 = arith.constant 0 : i32
    %c0_i32_0 = arith.constant 0 : i32
    %c0_i32_1 = arith.constant 0 : i32
    return %c0_i32, %c0_i32_0 : i32, i32
  }
  func.func @transform_4(%arg0: i32, %arg1: i32) -> (i32, i32) {
    %c0_i32 = arith.constant 0 : i32
    %c0_i32_0 = arith.constant 0 : i32
    return %arg0, %c0_i32 : i32, i32
  }
}

</mosaic_0001>

<bundles_post_ra>
// kernel: tpu_custom_call.1
= control target key start
LH: loop header
LB: loop body
LE: loop exit
PB: predicated region body
PF: predicated region fallthrough
CT: control target
= control target key end

     0   :  { %v59_v0 = vlaneseq  ;;  %s647_s0 = inlined_call_operand.vmem [shape: f32[8,16], index: 0, kind: input, shape index: {}]   ;;  %s648_s1 = inlined_call_operand.vmem [shape: f32[8,4], index: 1, kind: input, shape index: {}]   ;;  %s649_s2 = inlined_call_operand.vmem [shape: f32[16,4], index: 2, kind: input, shape index: {}]   ;;  %s650_s3 = inlined_call_operand.vmem [shape: f32[16,4], index: 3, kind: input, shape index: {}]   ;;  %s651_s4 = inlined_call_operand.hbm [shape: f32[1,1], index: 4, kind: output, shape index: {}]  }
   0x1   :  { %9 = vsyncpa [#allocation3], 0  ;;  %v577_v1 = vld [vmem:[%s647_s0] sm:$0xff]  ;;  %vm65_vm0 = vcmask 130048   ;;  %v102_v14 = vld [vmem:[%s649_s2 + $0x8] sm:$0xff]  ;;  %vm442_vm11 = vcmask 31744  }
   0x2   :  { %v579_v2 = vand.u32 127, %v59_v0  ;;  %v120_v15 = vand.u32 4294901760, %v102_v14  ;;  %v101_v16 = vld [vmem:[%s649_s2] sm:$0xff]  ;;  %v266_v26 = vld [vmem:[%s650_s3 + $0x8] sm:$0xff]  ;;  %vm56_vm12 = vcmask 0   ;;  %s548_s24 = smov [#allocation2]  }
   0x3   :  { %v122_v18 = vand.u32 4294901760, %v101_v16  ;;  %v284_v27 = vand.u32 4294901760, %v266_v26  ;;  %v265_v28 = vld [vmem:[%s650_s3] sm:$0xff]  ;;  %s492_s27 = sshll.u32 %s651_s4, 4  ;;  %s493_s27 = int_to_ptr.hbm [resolvable:$true] %s492_s27 }
   0x4   :  { %vm62_vm1 = vcmp.lt.s32.totalorder %v579_v2, 5  ;;  %vm80_vm2 = vcmp.ge.s32.totalorder %v579_v2, 7  ;;  %vm81_vm3 = vcmp.lt.s32.totalorder %v579_v2, 9  ;;  %vm71_vm4 = vcmp.ge.s32.totalorder %v579_v2, 5  ;;  %205 = vmatpush.msra.mxu3 %v120_v15  ;;  %121 = vmatpush.msra.mxu0 %v120_v15 }
   0x5   :  { %v64_v3 = vsel %vm62_vm1, %v577_v1, -1e+30  ;;  %vm588_vm5 = vmand %vm80_vm2, %vm81_vm3  ;;  %vm72_vm6 = vcmp.lt.s32.totalorder %v579_v2, 7  ;;  %vm89_vm7 = vcmp.ge.s32.totalorder %v579_v2, 9  ;;  %vm90_vm8 = vcmp.lt.s32.totalorder %v579_v2, 13 }
   0x6   :  { %v66_v5 = vsel %vm65_vm0, %v64_v3, -inf  ;;  %v83_v6 = vsel %vm588_vm5, %v577_v1, -1e+30  ;;  %vm599_vm9 = vmand %vm71_vm4, %vm72_vm6  ;;  %v148_v17 = vsub.f32 %v102_v14, %v120_v15  ;;  %v154_v20 = vsub.f32 %v101_v16, %v122_v18  ;;  %207 = vmatpush.msra.mxu3 %v122_v18  ;;  %123 = vmatpush.msra.mxu0 %v122_v18 }
   0x7   :  { %67 = vmax.xlane.f32.xlu0 %v66_v5  ;;  %v84_v8 = vsel %vm65_vm0, %v83_v6, -inf  ;;  %vm604_vm10 = vmand %vm89_vm7, %vm90_vm8  ;;  %v74_v10 = vsel %vm599_vm9, %v577_v1, -1e+30  ;;  %v312_v29 = vsub.f32 %v266_v26, %v284_v27  ;;  %v286_v30 = vand.u32 4294901760, %v265_v28 }
   0x8   :  { %85 = vmax.xlane.f32.xlu1 %v84_v8  ;;  %v92_v11 = vsel %vm604_vm10, %v577_v1, -1e+30  ;;  %v75_v12 = vsel %vm65_vm0, %v74_v10, -inf  ;;  %v149_v19 = vand.u32 4294901760, %v148_v17  ;;  %180 = vmatpush.msra.mxu2 %v148_v17  ;;  %v155_v22 = vand.u32 4294901760, %v154_v20 }
   0x9   :  { %v93_v13 = vsel %vm65_vm0, %v92_v11, -inf  ;;  %v313_v33 = vand.u32 4294901760, %v312_v29  ;;  %v318_v34 = vsub.f32 %v265_v28, %v286_v30  ;;  %v547_v28 = vmov 0.0  }
   0xa   :  { %v150_v21 = vsub.f32 %v148_v17, %v149_v19  ;;  %183 = vmatpush.msra.mxu2 %v154_v20  ;;  %232 = vmatpush.msrb.mxu0 %v149_v19  ;;  %v156_v24 = vsub.f32 %v154_v20, %v155_v22  ;;  %57 = vst.msk [vmem:[#allocation2] sm:$0x1] %vm56_vm12, %v547_v28 }
   0xb   :  { %v314_v35 = vsub.f32 %v312_v29, %v313_v33  ;;  %v319_v36 = vand.u32 4294901760, %v318_v34 }
   0xc   :  { %v151_v23 = vand.u32 4294901760, %v150_v21  ;;  %236 = vmatpush.msrb.mxu0 %v155_v22  ;;  %v157_v25 = vand.u32 4294901760, %v156_v24  ;;  %285 = vmatpush.msrb.mxu2 %v284_v27  ;;  %v432_v24 = vld [vmem:[%s648_s1] sm:$0xff]  ;;  %s490_s1 = sshll.u32 %s548_s24, 4  ;;  %s491_s1 = int_to_ptr.vmem [resolvable:$true] %s490_s1 }
   0xd   :  { %v315_v37 = vand.u32 4294901760, %v314_v35  ;;  %v320_v38 = vsub.f32 %v318_v34, %v319_v36 }
   0xe   :  { %152 = vmatpush.msra.mxu1 %v151_v23  ;;  %287 = vmatpush.msrb.mxu2 %v286_v30 }
   0xf   :  { %76 = vmax.xlane.f32.xlu0 %v75_v12  ;;  %316 = vmatpush.msrb.mxu3 %v315_v37  ;;  %v321_v39 = vand.u32 4294901760, %v320_v38 }
  0x10   :  { %94 = vmax.xlane.f32.xlu1 %v93_v13  ;;  %158 = vmatpush.msra.mxu1 %v157_v25 }
  0x11   :  { %322 = vmatpush.msrb.mxu3 %v321_v39 }
  0x12   :  { %257 = vmatpush.msrb.mxu1 %v120_v15 }
  0x14   :  { %259 = vmatpush.msrb.mxu1 %v122_v18 }
  0x7a   :  { %v68_v31 = vpop.xlane.xlu0 %67 }
  0x7b   :  { %v86_v32 = vpop.xlane.xlu1 %85  ;;  %v69_v41 = vsel %vm62_vm1, %v68_v31, 0.0 }
  0x7c   :  { %v87_v45 = vsel %vm588_vm5, %v86_v32, 0.0 }
  0x82   :  { %v77_v40 = vpop.xlane.xlu0 %76 }
  0x83   :  { %v78_v42 = vsel %vm599_vm9, %v77_v40, 0.0  ;;  %v95_v43 = vpop.xlane.xlu1 %94 }
  0x84   :  { %v79_v44 = vadd.f32 %v78_v42, %v69_v41  ;;  %v96_v46 = vsel %vm604_vm10, %v95_v43, 0.0 }
  0x86   :  { %v88_v47 = vadd.f32 %v87_v45, %v79_v44 }
  0x88   :  { %v97_v48 = vadd.f32 %v96_v46, %v88_v47 }
  0x8a   :  { %v98_v49 = vsub.f32 %v577_v1, %v97_v48  ;;  %v268_v51 = vsel %vm65_vm0, %v97_v48, 0 }
  0x8b   :  { %v288_v52 = vand.u32 4294901760, %v268_v51 }
  0x8c   :  { %v99_v50 = vmul.f32 1.442695, %v98_v49 }
  0x8d   :  { %v289_v54 = vsub.f32 %v268_v51, %v288_v52 }
  0x8e   :  { %517 = vpow2.f32 %v99_v50 }
  0x8f   :  { %v290_v58 = vand.u32 4294901760, %v289_v54 }
  0x91   :  { %v291_v61 = vsub.f32 %v289_v54, %v290_v58 }
  0x93   :  { %v292_v63 = vand.u32 4294901760, %v291_v61 }
  0x94   :  { %v518_v53 = vpop.eup %517 }
  0x95   :  { %v104_v55 = vsel %vm65_vm0, %v518_v53, 0 }
  0x96   :  { %v124_v56 = vand.u32 4294901760, %v104_v55 }
  0x98   :  { %160 = vmatmul.f32.vlgmr.msra.gmra.mxu1 %v124_v56  ;;  %v125_v57 = vsub.f32 %v104_v55, %v124_v56 }
  0x99   :  { %369 = vmatpush.msra.mxu1 %v284_v27 }
  0x9a   :  { %186 = vmatmul.f32.vlgmr.msra.gmra.mxu2 %v125_v57  ;;  %v126_v59 = vand.u32 4294901760, %v125_v57 }
  0x9b   :  { %396 = vmatpush.msra.mxu2 %v313_v33  ;;  %371 = vmatpush.msra.mxu1 %v286_v30 }
  0x9c   :  { %211 = vmatmul.f32.vlgmr.msra.gmra.mxu3 %v126_v59  ;;  %v127_v60 = vsub.f32 %v125_v57, %v126_v59 }
  0x9d   :  { %421 = vmatpush.msra.mxu3 %v284_v27  ;;  %400 = vmatpush.msra.mxu2 %v319_v36  ;;  %v441_v36 = vld [vmem:[#allocation2] sm:$0x1] }
  0x9e   :  { %v128_v62 = vand.u32 4294901760, %v127_v60 }
  0x9f   :  { %423 = vmatpush.msra.mxu3 %v286_v30 }
  0xa0   :  { %129 = vmatmul.f32.vlgmr.msra.gmra.mxu0 %v128_v62  ;;  %261 = vmatmul.f32.vlgmr.msrb.gmra.mxu1 %v124_v56 }
  0xa1   :  { %344 = vmatpush.msra.mxu0 %v312_v29 }
  0xa2   :  { %293 = vmatmul.f32.vlgmr.msrb.gmra.mxu2 %v292_v63 }
  0xa3   :  { %347 = vmatpush.msra.mxu0 %v318_v34 }
  0xa4   :  { %324 = vmatmul.f32.vlgmr.msrb.gmra.mxu3 %v288_v52 }
  0xa8   :  { %238 = vmatmul.f32.vlgmr.msrb.gmra.mxu0 %v124_v56  ;;  %375 = vmatmul.f32.vlgmr.msra.gmra.mxu1 %v290_v58 }
  0xaa   :  { %402 = vmatmul.f32.vlgmr.msra.gmra.mxu2 %v288_v52 }
  0xac   :  { %425 = vmatmul.f32.vlgmr.msra.gmra.mxu3 %v288_v52 }
  0xb0   :  { %350 = vmatmul.f32.vlgmr.msra.gmra.mxu0 %v289_v54 }
 0x115   :  { %v161_v0 = vpop.f32.mrf.mxu1 }
 0x11d   :  { %v130_v1 = vpop.f32.mrf.mxu0  ;;  %v187_v2 = vpop.f32.mrf.mxu2 }
 0x11e   :  { %v162_v3 = vadd.f32 %v161_v0, %v130_v1  ;;  %v262_v7 = vpop.f32.mrf.mxu1 }
 0x11f   :  { %v212_v4 = vpop.f32.mrf.mxu3 }
 0x120   :  { %v188_v5 = vadd.f32 %v187_v2, %v162_v3 }
 0x122   :  { %v213_v6 = vadd.f32 %v212_v4, %v188_v5 }
 0x125   :  { %v239_v8 = vpop.f32.mrf.mxu0  ;;  %v294_v10 = vpop.f32.mrf.mxu2 }
 0x126   :  { %v240_v9 = vadd.f32 %v239_v8, %v213_v6  ;;  %v376_v16 = vpop.f32.mrf.mxu1 }
 0x127   :  { %v325_v12 = vpop.f32.mrf.mxu3 }
 0x128   :  { %v263_v11 = vadd.f32 %v262_v7, %v240_v9  ;;  %v326_v13 = vadd.f32 %v325_v12, %v294_v10 }
 0x12a   :  { %519 = vlog2.f32 %v263_v11 }
 0x12d   :  { %v351_v14 = vpop.f32.mrf.mxu0  ;;  %v403_v19 = vpop.f32.mrf.mxu2 }
 0x12e   :  { %v352_v15 = vadd.f32 %v351_v14, %v326_v13 }
 0x12f   :  { %v426_v21 = vpop.f32.mrf.mxu3 }
 0x130   :  { %v377_v17 = vadd.f32 %v376_v16, %v352_v15  ;;  %v520_v18 = vpop.eup %519 }
 0x131   :  { %v430_v23 = vmul.f32 0.6931472, %v520_v18 }
 0x132   :  { %v404_v20 = vadd.f32 %v403_v19, %v377_v17 }
 0x134   :  { %v427_v22 = vadd.f32 %v426_v21, %v404_v20 }
 0x136   :  { %v431_v25 = vadd.f32 %v430_v23, %v427_v22 }
 0x138   :  { %v433_v26 = vsub.f32 %v431_v25, %v432_v24 }
 0x13a   :  { %v443_v27 = vsel %vm442_vm11, %v433_v26, 0.0 }
 0x13b   :  { %444 = vadd.xlane.f32.xlu2 %v443_v27 }
 0x1ae   :  { %v445_v29 = vpop.xlane.xlu2 %444 }
 0x1af   :  { %v446_v30 = vrot.slane %v445_v29, 4 }
 0x1b1   :  { %v447_v31 = vadd.f32 %v446_v30, %v445_v29 }
 0x1b3   :  { %v448_v32 = vrot.slane %v447_v31, 2 }
 0x1b5   :  { %v449_v33 = vadd.f32 %v448_v32, %v447_v31 }
 0x1b7   :  { %v450_v34 = vrot.slane %v449_v33, 1 }
 0x1b9   :  { %v451_v35 = vadd.f32 %v450_v34, %v449_v33 }
 0x1bb   :  { %513 = vpush %v451_v35 }
 0x1ec   :  { %s514_s28 = spop %513 }
 0x1ed   :  { %v453_v37 = vstv %s514_s28 }
 0x1ee   :  { %v454_v38 = vadd.f32 %v453_v37, %v441_v36 }
 0x1f0   :  { %456 = vst.msk [vmem:[#allocation2] sm:$0x1] %vm56_vm12, %v454_v38 }
 0x1f1   :  { %495 = dma.vmem_to_hbm [thread:$0]  %s491_s1, 16, %s493_s27, [#allocation3]  }
 0x1f2   :  { %545 = dma.done.wait [#allocation3], 16  }
 0x1f3   :  { %546 = vsyncadd [#allocation3], 4294967280 }
 0x1f4   :  { %500 = vsyncpa [#allocation3], 1 }

</bundles_post_ra>
